<compile_context>
chip_gen: v7x
topology: tpu7x:2x2x1
jax: 0.10.0
libtpu: 0.0.40
codegen_flags: <defaults>
</compile_context>

<pallas_src>
import functools

import jax
import jax.numpy as jnp
from jax.experimental import pallas as pl
from jax.experimental.pallas import tpu as pltpu

_LANE = 128
_SUBLANE = 8


def _round_up(x, m):
    return (x + m - 1) // m * m


def _mlp_fused_kernel(*refs, n_layers, last_op):
    # refs = (x_ref, w0, b0, w1, b1, ..., w_{n-1}, b_{n-1}, o_ref)
    x_ref = refs[0]
    o_ref = refs[-1]
    wb = refs[1:-1]

    h = x_ref[...].astype(jnp.bfloat16)  # bf16 operands for the MXU
    for i in range(n_layers):
        w = wb[2 * i][...]        # (Din_pad, Dout_pad) bf16, padded with zeros
        b = wb[2 * i + 1][...]    # (1, Dout_pad) f32, padded with zeros
        y = jnp.dot(h, w, preferred_element_type=jnp.float32) + b  # f32 accumulate
        if i < n_layers - 1:
            # nn.LeakyReLU() default negative_slope = 0.01, kept in f32 (v5e-friendly)
            y = jnp.where(y >= 0, y, jnp.float32(0.01) * y)
            h = y.astype(jnp.bfloat16)
        else:
            if last_op == "sigmoid":
                y = jax.nn.sigmoid(y)
            o_ref[...] = y.astype(o_ref.dtype)


class MLP:
    """JAX/Pallas port of lib/network/MLP.py::MLP (forward pass).

    dims: list of layer widths, e.g. [32, 64, 64, 16]
    last_op: None or "sigmoid" (applied after the final Linear).
    """

    def __init__(self, dims, last_op=None, key=jax.random.PRNGKey(0), dtype=jnp.float32):
        assert len(dims) >= 2
        self.dims = list(dims)
        self.last_op = last_op
        self.out_dtype = dtype

        # Unpadded f32 parameters (PyTorch nn.Linear default init range), kept
        # for the pure-JAX reference.
        self.params = []
        for i in range(len(dims) - 1):
            key, kw, kb = jax.random.split(key, 3)
            bound = 1.0 / (dims[i] ** 0.5)
            w = jax.random.uniform(kw, (dims[i], dims[i + 1]), jnp.float32, -bound, bound)
            b = jax.random.uniform(kb, (dims[i + 1],), jnp.float32, -bound, bound)
            self.params.append((w, b))

        # Hoisted out of the per-forward path: lane-padded (to 128) bf16 weights
        # and (1, Dout_pad) f32 biases in kernel layout.
        self._dims_pad = [_round_up(d, _LANE) for d in dims]
        self._w_pad = []
        self._b_pad = []
        for i, (w, b) in enumerate(self.params):
            di, do = self._dims_pad[i], self._dims_pad[i + 1]
            wp = jnp.zeros((di, do), jnp.bfloat16).at[: dims[i], : dims[i + 1]].set(
                w.astype(jnp.bfloat16))
            bp = jnp.zeros((1, do), jnp.float32).at[0, : dims[i + 1]].set(b)
            self._w_pad.append(wp)
            self._b_pad.append(bp)

        self._forward = jax.jit(self._forward_impl)

    def __call__(self, x):
        return self._forward(x)

    def _forward_impl(self, x):
        B, Din = x.shape
        assert Din == self.dims[0]
        n_layers = len(self.dims) - 1
        d_in_pad = self._dims_pad[0]
        d_out_pad = self._dims_pad[-1]

        # Batch tiling: one tile for small batches, TM=512 tiles for large ones.
        B_pad = _round_up(max(B, _SUBLANE), _SUBLANE)
        if B_pad <= 1024:
            TM = B_pad
        else:
            TM = 512
            B_pad = _round_up(B_pad, TM)

        xp = jnp.zeros((B_pad, d_in_pad), jnp.float32).at[:B, :Din].set(
            x.astype(jnp.float32))

        in_specs = [pl.BlockSpec((TM, d_in_pad), lambda i: (i, 0))]
        operands = [xp]
        for li in range(n_layers):
            di, do = self._dims_pad[li], self._dims_pad[li + 1]
            # Weights/biases: full-array blocks, same block every grid step ->
            # loaded once, stay resident in VMEM across the batch grid.
            in_specs.append(pl.BlockSpec((di, do), lambda i: (0, 0)))
            in_specs.append(pl.BlockSpec((1, do), lambda i: (0, 0)))
            operands.append(self._w_pad[li])
            operands.append(self._b_pad[li])

        flops = 2 * B_pad * sum(
            self._dims_pad[i] * self._dims_pad[i + 1] for i in range(n_layers))
        transcendentals = B_pad * d_out_pad if self.last_op == "sigmoid" else 0
        bytes_accessed = int(
            xp.size * xp.dtype.itemsize
            + sum(w.size * w.dtype.itemsize + b.size * b.dtype.itemsize
                  for w, b in zip(self._w_pad, self._b_pad))
            + B_pad * d_out_pad * 4)

        kernel = functools.partial(
            _mlp_fused_kernel, n_layers=n_layers, last_op=self.last_op)

        out = pl.pallas_call(
            kernel,
            out_shape=jax.ShapeDtypeStruct((B_pad, d_out_pad), jnp.float32),
            grid=(B_pad // TM,),
            in_specs=in_specs,
            out_specs=pl.BlockSpec((TM, d_out_pad), lambda i: (i, 0)),
            compiler_params=pltpu.CompilerParams(
                dimension_semantics=("parallel",)),
            cost_estimate=pl.CostEstimate(
                flops=flops,
                transcendentals=transcendentals,
                bytes_accessed=bytes_accessed),
        )(*operands)

        return out[:B, : self.dims[-1]].astype(self.out_dtype)


def _reference_forward_bf16(mlp, x):
    """Pure-JAX reference mirroring the kernel math (bf16 matmul, f32 accumulate)."""
    h = x.astype(jnp.float32)
    n = len(mlp.params)
    for i, (w, b) in enumerate(mlp.params):
        y = jnp.dot(h.astype(jnp.bfloat16), w.astype(jnp.bfloat16),
                    preferred_element_type=jnp.float32) + b
        if i < n - 1:
            y = jnp.where(y >= 0, y, 0.01 * y)
        elif mlp.last_op == "sigmoid":
            y = jax.nn.sigmoid(y)
        h = y
    return h.astype(mlp.out_dtype)


def _reference_forward_f32(mlp, x):
    """Full-f32 reference (PyTorch semantics)."""
    h = x.astype(jnp.float32)
    n = len(mlp.params)
    for i, (w, b) in enumerate(mlp.params):
        y = h @ w + b
        if i < n - 1:
            y = jnp.where(y >= 0, y, 0.01 * y)
        elif mlp.last_op == "sigmoid":
            y = jax.nn.sigmoid(y)
        h = y
    return h.astype(mlp.out_dtype)


if __name__ == "__main__":
    key = jax.random.PRNGKey(0)
    k_in, k_params = jax.random.split(key)

    dims = [32, 64, 64, 16]
    batch = 8
    x = jax.random.normal(k_in, (batch, dims[0]), dtype=jnp.float32)

    mlp = MLP(dims, last_op=None, key=k_params)
    y = jax.block_until_ready(mlp(x))
    assert y.shape == (batch, dims[-1])
    assert jnp.allclose(y, _reference_forward_bf16(mlp, x), atol=1e-4, rtol=1e-4)
    assert jnp.allclose(y, _reference_forward_f32(mlp, x), atol=1e-1, rtol=1e-1)

    # Optional last_op (sigmoid), fused into the same kernel.
    mlp_sig = MLP(dims, last_op="sigmoid", key=k_params)
    y_sig = jax.block_until_ready(mlp_sig(x))
    assert jnp.allclose(y_sig, _reference_forward_bf16(mlp_sig, x), atol=1e-4, rtol=1e-4)

    # Exercise the batch-tiled path (grid > 1, ragged batch).
    xb = jax.random.normal(k_in, (2051, dims[0]), dtype=jnp.float32)
    yb = jax.block_until_ready(mlp(xb))
    assert yb.shape == (2051, dims[-1])
    assert jnp.allclose(yb, _reference_forward_bf16(mlp, xb), atol=1e-4, rtol=1e-4)

    print("KERNEL_OK")
</pallas_src>

<mosaic_0001>
module attributes {stable_mosaic.version = 11 : i64} {
  func.func @_mlp_fused_kernel(%arg0: i32, %arg1: memref<8x128xf32, #tpu.memory_space<vmem>>, %arg2: memref<128x128xbf16, #tpu.memory_space<vmem>>, %arg3: memref<1x128xf32, #tpu.memory_space<vmem>>, %arg4: memref<128x128xbf16, #tpu.memory_space<vmem>>, %arg5: memref<1x128xf32, #tpu.memory_space<vmem>>, %arg6: memref<128x128xbf16, #tpu.memory_space<vmem>>, %arg7: memref<1x128xf32, #tpu.memory_space<vmem>>, %arg8: memref<8x128xf32, #tpu.memory_space<vmem>>) attributes {dimension_semantics = [#tpu.dimension_semantics<parallel>], iteration_bounds = array<i64: 1>, scalar_prefetch = 0 : i64, scratch_operands = 0 : i64, tpu.core_type = #tpu.core_type<tc>, window_params = [{transform_indices = @transform_0, window_bounds = array<i64: 8, 128>}, {pipeline_mode = #tpu.pipeline_mode<synchronous>, transform_indices = @transform_1, window_bounds = array<i64: 128, 128>}, {pipeline_mode = #tpu.pipeline_mode<synchronous>, transform_indices = @transform_2, window_bounds = array<i64: 1, 128>}, {pipeline_mode = #tpu.pipeline_mode<synchronous>, transform_indices = @transform_3, window_bounds = array<i64: 128, 128>}, {pipeline_mode = #tpu.pipeline_mode<synchronous>, transform_indices = @transform_4, window_bounds = array<i64: 1, 128>}, {pipeline_mode = #tpu.pipeline_mode<synchronous>, transform_indices = @transform_5, window_bounds = array<i64: 128, 128>}, {pipeline_mode = #tpu.pipeline_mode<synchronous>, transform_indices = @transform_6, window_bounds = array<i64: 1, 128>}, {transform_indices = @transform_7, window_bounds = array<i64: 8, 128>}]} {
    %c0 = arith.constant 0 : index
    %c0_0 = arith.constant 0 : index
    %0 = vector.load %arg1[%c0, %c0_0] : memref<8x128xf32, #tpu.memory_space<vmem>>, vector<8x128xf32>
    %1 = arith.truncf %0 : vector<8x128xf32> to vector<8x128xbf16>
    %c0_1 = arith.constant 0 : index
    %c0_2 = arith.constant 0 : index
    %2 = vector.load %arg2[%c0_1, %c0_2] : memref<128x128xbf16, #tpu.memory_space<vmem>>, vector<128x128xbf16>
    %c0_3 = arith.constant 0 : index
    %c0_4 = arith.constant 0 : index
    %3 = vector.load %arg3[%c0_3, %c0_4] : memref<1x128xf32, #tpu.memory_space<vmem>>, vector<1x128xf32>
    %cst = arith.constant dense<0.000000e+00> : vector<8x128xf32>
    %4 = tpu.matmul %1, %2, %cst {dimension_numbers = #tpu.dot_dimension_numbers<[1], [0], [0], [1], [0, 0, 1, 1], [], []>} : vector<8x128xbf16>, vector<128x128xbf16>, vector<8x128xf32> -> vector<8x128xf32>
    %5 = vector.broadcast %3 : vector<1x128xf32> to vector<8x128xf32>
    %6 = arith.addf %4, %5 : vector<8x128xf32>
    %cst_5 = arith.constant 0.000000e+00 : f32
    %7 = vector.broadcast %cst_5 : f32 to vector<8x128xf32>
    %8 = arith.cmpf oge, %6, %7 : vector<8x128xf32>
    %cst_6 = arith.constant 0.00999999977 : f32
    %9 = vector.broadcast %cst_6 : f32 to vector<8x128xf32>
    %10 = arith.mulf %9, %6 : vector<8x128xf32>
    %11 = arith.select %8, %6, %10 : vector<8x128xi1>, vector<8x128xf32>
    %12 = arith.truncf %11 : vector<8x128xf32> to vector<8x128xbf16>
    %c0_7 = arith.constant 0 : index
    %c0_8 = arith.constant 0 : index
    %13 = vector.load %arg4[%c0_7, %c0_8] : memref<128x128xbf16, #tpu.memory_space<vmem>>, vector<128x128xbf16>
    %c0_9 = arith.constant 0 : index
    %c0_10 = arith.constant 0 : index
    %14 = vector.load %arg5[%c0_9, %c0_10] : memref<1x128xf32, #tpu.memory_space<vmem>>, vector<1x128xf32>
    %cst_11 = arith.constant dense<0.000000e+00> : vector<8x128xf32>
    %15 = tpu.matmul %12, %13, %cst_11 {dimension_numbers = #tpu.dot_dimension_numbers<[1], [0], [0], [1], [0, 0, 1, 1], [], []>} : vector<8x128xbf16>, vector<128x128xbf16>, vector<8x128xf32> -> vector<8x128xf32>
    %16 = vector.broadcast %14 : vector<1x128xf32> to vector<8x128xf32>
    %17 = arith.addf %15, %16 : vector<8x128xf32>
    %cst_12 = arith.constant 0.000000e+00 : f32
    %18 = vector.broadcast %cst_12 : f32 to vector<8x128xf32>
    %19 = arith.cmpf oge, %17, %18 : vector<8x128xf32>
    %cst_13 = arith.constant 0.00999999977 : f32
    %20 = vector.broadcast %cst_13 : f32 to vector<8x128xf32>
    %21 = arith.mulf %20, %17 : vector<8x128xf32>
    %22 = arith.select %19, %17, %21 : vector<8x128xi1>, vector<8x128xf32>
    %23 = arith.truncf %22 : vector<8x128xf32> to vector<8x128xbf16>
    %c0_14 = arith.constant 0 : index
    %c0_15 = arith.constant 0 : index
    %24 = vector.load %arg6[%c0_14, %c0_15] : memref<128x128xbf16, #tpu.memory_space<vmem>>, vector<128x128xbf16>
    %c0_16 = arith.constant 0 : index
    %c0_17 = arith.constant 0 : index
    %25 = vector.load %arg7[%c0_16, %c0_17] : memref<1x128xf32, #tpu.memory_space<vmem>>, vector<1x128xf32>
    %cst_18 = arith.constant dense<0.000000e+00> : vector<8x128xf32>
    %26 = tpu.matmul %23, %24, %cst_18 {dimension_numbers = #tpu.dot_dimension_numbers<[1], [0], [0], [1], [0, 0, 1, 1], [], []>} : vector<8x128xbf16>, vector<128x128xbf16>, vector<8x128xf32> -> vector<8x128xf32>
    %27 = vector.broadcast %25 : vector<1x128xf32> to vector<8x128xf32>
    %28 = arith.addf %26, %27 : vector<8x128xf32>
    %c0_19 = arith.constant 0 : index
    %c0_20 = arith.constant 0 : index
    %29 = vector.load %arg8[%c0_19, %c0_20] : memref<8x128xf32, #tpu.memory_space<vmem>>, vector<8x128xf32>
    tpu.vector_store %arg8[%c0_19, %c0_20], %28 {strides = array<i32>} : memref<8x128xf32, #tpu.memory_space<vmem>>, vector<8x128xf32>,
    return
  }
  func.func @transform_0(%arg0: i32) -> (i32, i32) {
    %c0_i32 = arith.constant 0 : i32
    %c0_i32_0 = arith.constant 0 : i32
    return %arg0, %c0_i32 : i32, i32
  }
  func.func @transform_1(%arg0: i32) -> (i32, i32) {
    %c0_i32 = arith.constant 0 : i32
    %c0_i32_0 = arith.constant 0 : i32
    %c0_i32_1 = arith.constant 0 : i32
    return %c0_i32, %c0_i32_0 : i32, i32
  }
  func.func @transform_2(%arg0: i32) -> (i32, i32) {
    %c0_i32 = arith.constant 0 : i32
    %c0_i32_0 = arith.constant 0 : i32
    %c0_i32_1 = arith.constant 0 : i32
    return %c0_i32, %c0_i32_0 : i32, i32
  }
  func.func @transform_3(%arg0: i32) -> (i32, i32) {
    %c0_i32 = arith.constant 0 : i32
    %c0_i32_0 = arith.constant 0 : i32
    %c0_i32_1 = arith.constant 0 : i32
    return %c0_i32, %c0_i32_0 : i32, i32
  }
  func.func @transform_4(%arg0: i32) -> (i32, i32) {
    %c0_i32 = arith.constant 0 : i32
    %c0_i32_0 = arith.constant 0 : i32
    %c0_i32_1 = arith.constant 0 : i32
    return %c0_i32, %c0_i32_0 : i32, i32
  }
  func.func @transform_5(%arg0: i32) -> (i32, i32) {
    %c0_i32 = arith.constant 0 : i32
    %c0_i32_0 = arith.constant 0 : i32
    %c0_i32_1 = arith.constant 0 : i32
    return %c0_i32, %c0_i32_0 : i32, i32
  }
  func.func @transform_6(%arg0: i32) -> (i32, i32) {
    %c0_i32 = arith.constant 0 : i32
    %c0_i32_0 = arith.constant 0 : i32
    %c0_i32_1 = arith.constant 0 : i32
    return %c0_i32, %c0_i32_0 : i32, i32
  }
  func.func @transform_7(%arg0: i32) -> (i32, i32) {
    %c0_i32 = arith.constant 0 : i32
    %c0_i32_0 = arith.constant 0 : i32
    return %arg0, %c0_i32 : i32, i32
  }
}

</mosaic_0001>

<bundles_post_ra>
// kernel: _forward_impl.1
= control target key start
LH: loop header
LB: loop body
LE: loop exit
PB: predicated region body
PF: predicated region fallthrough
CT: control target
= control target key end

     0   :  { %12 = vsyncpa [#allocation3], 0  ;;  %s782_s0 = inlined_call_operand.vmem [shape: f32[8,128], index: 0, kind: input, shape index: {}]   ;;  %s783_s1 = inlined_call_operand.hbm [shape: bf16[128,128], index: 1, kind: input, shape index: {}]   ;;  %s784_s2 = inlined_call_operand.vmem [shape: f32[1,128], index: 2, kind: input, shape index: {}]   ;;  %s785_s3 = inlined_call_operand.hbm [shape: bf16[128,128], index: 3, kind: input, shape index: {}]   ;;  %s786_s4 = inlined_call_operand.vmem [shape: f32[1,128], index: 4, kind: input, shape index: {}]   ;;  %s787_s5 = inlined_call_operand.vmem [shape: bf16[128,128], index: 5, kind: input, shape index: {}]   ;;  %s788_s6 = inlined_call_operand.vmem [shape: f32[1,128], index: 6, kind: input, shape index: {}]   ;;  %s789_s7 = inlined_call_operand.hbm [shape: f32[8,128], index: 7, kind: output, shape index: {}]  }
   0x1   :  { %13 = vsyncpa [#allocation6], 0 }
   0x2   :  { %14 = vsyncpa [#allocation4], 0  ;;  %s633_s24 = smov [#allocation2]   ;;  %s561_s28 = scalar_lea.hbm %s783_s1, 1024 }
   0x3   :  { %s22_s25 = sshll.u32 %s633_s24, 4  ;;  %p562_p0 = scmp.ne.s32.totalorder %s783_s1, %s561_s28  ;;  %s23_s25 = int_to_ptr.vmem [resolvable:$true] %s22_s25 }
   0x4   :  { %p565_p1 = scmp.lt.u32.totalorder %s561_s28, %s783_s1 }
   0x6   :  { %p567_p2 = pnand %p565_p1, %p562_p0 }
   0x8   :  { %570 = shalt.err (!%p567_p2)
}
   0x9   :  { %s571_s10 = scalar_lea.vmem %s23_s25, 1024  ;;  %p576_p4 = scmp.lt.s32.totalorder %s23_s25, %s23_s25 }
   0xa   :  { %p572_p3 = scmp.ne.s32.totalorder %s23_s25, %s571_s10  ;;  %p577_p5 = scmp.lt.s32.totalorder %s571_s10, %s571_s10 }
   0xc   :  { %p578_p6 = por %p577_p5, %p576_p4 }
   0xe   :  { %p579_p7 = pnand %p578_p6, %p572_p3 }
  0x10   :  { %582 = shalt.err (!%p579_p7)
}
  0x11   :  { %s634_s11 = smov 64   ;;  %s635_s12 = smov 4  }
  0x12   :  { %28 = dma.hbm_to_vmem [thread:$0]  %s783_s1, 1024, %s23_s25, [#allocation3], %s634_s11, %s634_s11, %s635_s12  }
  0x13   :  { %s636_s15 = smov [#allocation5]   ;;  %s583_s19 = scalar_lea.hbm %s785_s3, 1024 }
  0x14   :  { %s36_s16 = sshll.u32 %s636_s15, 4  ;;  %p584_p8 = scmp.ne.s32.totalorder %s785_s3, %s583_s19  ;;  %s37_s16 = int_to_ptr.vmem [resolvable:$true] %s36_s16 }
  0x15   :  { %p587_p9 = scmp.lt.u32.totalorder %s583_s19, %s785_s3 }
  0x17   :  { %p589_p10 = pnand %p587_p9, %p584_p8 }
  0x19   :  { %592 = shalt.err (!%p589_p10)
}
  0x1a   :  { %s593_s24 = scalar_lea.vmem %s37_s16, 1024  ;;  %p598_p12 = scmp.lt.s32.totalorder %s37_s16, %s37_s16 }
  0x1b   :  { %p594_p11 = scmp.ne.s32.totalorder %s37_s16, %s593_s24  ;;  %p599_p13 = scmp.lt.s32.totalorder %s593_s24, %s593_s24 }
  0x1d   :  { %p600_p0 = por %p599_p13, %p598_p12 }
  0x1f   :  { %p601_p1 = pnand %p600_p0, %p594_p11 }
  0x21   :  { %604 = shalt.err (!%p601_p1)
}
  0x22   :  { %42 = dma.hbm_to_vmem [thread:$0]  %s785_s3, 1024, %s37_s16, [#allocation6], %s634_s11, %s634_s11, %s635_s12  }
  0x23   :  { %627 = dma.done.wait [#allocation3], 1024  }
  0x24   :  { %628 = vsyncadd [#allocation3], 4294966272 }
  0x25   :  { %629 = dma.done.wait [#allocation6], 1024  }
  0x26   :  { %630 = vsyncadd [#allocation6], 4294966272  ;;  %v637_v0 = vmov 0.0   ;;  %vm638_vm0 = vmmov 0   ;;  %v537_v1 = vld [vmem:[#allocation2] sm:$0xff]   ;;  %v538_v2 = vld [vmem:[#allocation2 + $0x8] sm:$0xff]  }
  0x27   :  { %470 = vmatprep.subr.bf16.mxu0 %v637_v0  ;;  %486 = vmatprep.mubr.msk.bf16.mxu0 %vm638_vm0, %v637_v0  ;;  %v539_v3 = vld [vmem:[#allocation2 + $0x10] sm:$0xff]   ;;  %v545_v4 = vld [vmem:[#allocation5] sm:$0xff]   ;;  %v540_v5 = vld [vmem:[#allocation2 + $0x18] sm:$0xff]  }
  0x28   :  { %490 = vmatprep.subr.bf16.mxu1 %v637_v0  ;;  %506 = vmatprep.mubr.msk.bf16.mxu1 %vm638_vm0, %v637_v0  ;;  %v546_v6 = vld [vmem:[#allocation5 + $0x8] sm:$0xff]   ;;  %v541_v7 = vld [vmem:[#allocation2 + $0x20] sm:$0xff]   ;;  %v547_v8 = vld [vmem:[#allocation5 + $0x10] sm:$0xff]  }
  0x29   :  { %471 = vmatpush3.bf16.msra.mxu0 %v537_v1  ;;  %491 = vmatpush3.bf16.msra.mxu1 %v545_v4  ;;  %v542_v9 = vld [vmem:[#allocation2 + $0x28] sm:$0xff]   ;;  %v548_v10 = vld [vmem:[#allocation5 + $0x18] sm:$0xff]   ;;  %v543_v11 = vld [vmem:[#allocation2 + $0x30] sm:$0xff]  }
  0x2a   :  { %472 = vmatprep.subr.bf16.mxu0 %v637_v0  ;;  %492 = vmatprep.subr.bf16.mxu1 %v637_v0  ;;  %v549_v12 = vld [vmem:[#allocation5 + $0x20] sm:$0xff]   ;;  %v544_v13 = vld [vmem:[#allocation2 + $0x38] sm:$0xff]   ;;  %v550_v15 = vld [vmem:[#allocation5 + $0x28] sm:$0xff]  }
  0x2b   :  { %v56_v14 = vld [vmem:[%s782_s0] sm:$0xff]  ;;  %v551_v17 = vld [vmem:[#allocation5 + $0x30] sm:$0xff]   ;;  %v552_v18 = vld [vmem:[#allocation5 + $0x38] sm:$0xff]  }
  0x2c   :  { %v57_v16 = vpack.c.bf16 %v56_v14, %v56_v14  ;;  %v553_v19 = vld [vmem:[%s787_s5] sm:$0xff]   ;;  %v554_v20 = vld [vmem:[%s787_s5 + $0x8] sm:$0xff]   ;;  %v555_v21 = vld [vmem:[%s787_s5 + $0x10] sm:$0xff]  }
  0x2d   :  { %473 = vmatpush3.bf16.msra.mxu0 %v538_v2  ;;  %493 = vmatpush3.bf16.msra.mxu1 %v546_v6  ;;  %v556_v22 = vld [vmem:[%s787_s5 + $0x18] sm:$0xff]   ;;  %v557_v23 = vld [vmem:[%s787_s5 + $0x20] sm:$0xff]   ;;  %v558_v24 = vld [vmem:[%s787_s5 + $0x28] sm:$0xff]  }
  0x2e   :  { %474 = vmatprep.subr.bf16.mxu0 %v637_v0  ;;  %494 = vmatprep.subr.bf16.mxu1 %v637_v0  ;;  %v416_v25 = vld [vmem:[%s784_s2] ss:$0 sm:$0xff]  ;;  %v559_v34 = vld [vmem:[%s787_s5 + $0x30] sm:$0xff]   ;;  %v560_v35 = vld [vmem:[%s787_s5 + $0x38] sm:$0xff]   ;;  %s639_s5 = smov [#allocation7]  }
  0x2f   :  { %v425_v36 = vld [vmem:[%s786_s4] ss:$0 sm:$0xff]  ;;  %s406_s24 = sshll.u32 %s639_s5, 4  ;;  %s407_s24 = int_to_ptr.vmem [resolvable:$true] %s406_s24 }
  0x30   :  { %v434_v45 = vld [vmem:[%s788_s6] ss:$0 sm:$0xff]  ;;  %s605_s4 = scalar_lea.vmem %s407_s24, 128  ;;  %p610_p3 = scmp.lt.s32.totalorder %s407_s24, %s407_s24 }
  0x31   :  { %475 = vmatpush3.bf16.msra.mxu0 %v539_v3  ;;  %495 = vmatpush3.bf16.msra.mxu1 %v547_v8  ;;  %p606_p2 = scmp.ne.s32.totalorder %s407_s24, %s605_s4  ;;  %p611_p4 = scmp.lt.s32.totalorder %s605_s4, %s605_s4 }
  0x32   :  { %476 = vmatprep.subr.bf16.mxu0 %v637_v0  ;;  %496 = vmatprep.subr.bf16.mxu1 %v637_v0 }
  0x33   :  { %p612_p5 = por %p611_p4, %p610_p3 }
  0x35   :  { %477 = vmatpush3.bf16.msra.mxu0 %v540_v5  ;;  %497 = vmatpush3.bf16.msra.mxu1 %v548_v10  ;;  %p613_p6 = pnand %p612_p5, %p606_p2 }
  0x36   :  { %478 = vmatprep.subr.bf16.mxu0 %v637_v0  ;;  %498 = vmatprep.subr.bf16.mxu1 %v637_v0 }
  0x39   :  { %479 = vmatpush3.bf16.msra.mxu0 %v541_v7  ;;  %499 = vmatpush3.bf16.msra.mxu1 %v549_v12 }
  0x3a   :  { %480 = vmatprep.subr.bf16.mxu0 %v637_v0  ;;  %500 = vmatprep.subr.bf16.mxu1 %v637_v0 }
  0x3d   :  { %481 = vmatpush3.bf16.msra.mxu0 %v542_v9  ;;  %501 = vmatpush3.bf16.msra.mxu1 %v550_v15 }
  0x3e   :  { %482 = vmatprep.subr.bf16.mxu0 %v637_v0  ;;  %502 = vmatprep.subr.bf16.mxu1 %v637_v0 }
  0x41   :  { %483 = vmatpush3.bf16.msra.mxu0 %v543_v11  ;;  %503 = vmatpush3.bf16.msra.mxu1 %v551_v17 }
  0x42   :  { %484 = vmatprep.subr.bf16.mxu0 %v637_v0  ;;  %504 = vmatprep.subr.bf16.mxu1 %v637_v0 }
  0x45   :  { %485 = vmatpush3.bf16.msra.mxu0 %v544_v13  ;;  %505 = vmatpush3.bf16.msra.mxu1 %v552_v18 }
  0x46   :  { %510 = vmatprep.subr.bf16.mxu0 %v637_v0 }
  0x48   :  { %487 = vmatmul.mubr.bf16.vlgmr.msra.gmra.mrb[0].mxu0 %v57_v16 }
  0x49   :  { %526 = vmatprep.mubr.msk.bf16.mxu0 %vm638_vm0, %v637_v0  ;;  %511 = vmatpush3.bf16.msra.mxu0 %v553_v19 }
  0x4a   :  { %512 = vmatprep.subr.bf16.mxu0 %v637_v0 }
  0x4d   :  { %513 = vmatpush3.bf16.msra.mxu0 %v554_v20 }
  0x4e   :  { %514 = vmatprep.subr.bf16.mxu0 %v637_v0 }
  0x51   :  { %515 = vmatpush3.bf16.msra.mxu0 %v555_v21 }
  0x52   :  { %516 = vmatprep.subr.bf16.mxu0 %v637_v0 }
  0x55   :  { %517 = vmatpush3.bf16.msra.mxu0 %v556_v22 }
  0x56   :  { %518 = vmatprep.subr.bf16.mxu0 %v637_v0 }
  0x59   :  { %519 = vmatpush3.bf16.msra.mxu0 %v557_v23 }
  0x5a   :  { %520 = vmatprep.subr.bf16.mxu0 %v637_v0 }
  0x5d   :  { %521 = vmatpush3.bf16.msra.mxu0 %v558_v24 }
  0x5e   :  { %522 = vmatprep.subr.bf16.mxu0 %v637_v0 }
  0x61   :  { %523 = vmatpush3.bf16.msra.mxu0 %v559_v34 }
  0x62   :  { %524 = vmatprep.subr.bf16.mxu0 %v637_v0 }
  0x65   :  { %525 = vmatpush3.bf16.msra.mxu0 %v560_v35 }
 0x11b   :  { %v163_v26 = vpop.f32.mrb[0].mxu0 }
 0x11c   :  { %v164_v27 = vadd.f32 %v416_v25, %v163_v26  ;;  %v488_v28 = vpop.f32.mrb[1].mxu0 }
 0x11d   :  { %v166_v29 = vpop.f32.mrb[2].mxu0 }
 0x11e   :  { %vm169_vm1 = vcmp.ge.f32.partialorder %v164_v27, 0.0  ;;  %v170_v30 = vmul.f32 0.01, %v164_v27  ;;  %v489_v31 = vpop.f32.mrb[3].mxu0 }
 0x120   :  { %v171_v32 = vsel %vm169_vm1, %v164_v27, %v170_v30 }
 0x121   :  { %v172_v33 = vpack.c.bf16 %v171_v32, %v171_v32 }
 0x123   :  { %507 = vmatmul.mubr.bf16.vlgmr.msra.gmra.mrb[0].mxu1 %v172_v33 }
 0x1f6   :  { %v278_v37 = vpop.f32.mrb[0].mxu1 }
 0x1f7   :  { %v279_v38 = vadd.f32 %v425_v36, %v278_v37  ;;  %v508_v39 = vpop.f32.mrb[1].mxu1 }
 0x1f8   :  { %v281_v40 = vpop.f32.mrb[2].mxu1 }
 0x1f9   :  { %vm284_vm2 = vcmp.ge.f32.partialorder %v279_v38, 0.0  ;;  %v285_v41 = vmul.f32 0.01, %v279_v38  ;;  %v509_v42 = vpop.f32.mrb[3].mxu1 }
 0x1fb   :  { %v286_v43 = vsel %vm284_vm2, %v279_v38, %v285_v41 }
 0x1fc   :  { %v287_v44 = vpack.c.bf16 %v286_v43, %v286_v43 }
 0x1fe   :  { %527 = vmatmul.mubr.bf16.vlgmr.msra.gmra.mrb[4].mxu0 %v287_v44 }
 0x2d1   :  { %v393_v46 = vpop.f32.mrb[4].mxu0 }
 0x2d2   :  { %v394_v47 = vadd.f32 %v434_v45, %v393_v46  ;;  %v528_v48 = vpop.f32.mrb[5].mxu0 }
 0x2d3   :  { %v396_v49 = vpop.f32.mrb[6].mxu0 }
 0x2d4   :  { %399 = vst [vmem:[#allocation7] sm:$0xff] %v394_v47  ;;  %v529_v50 = vpop.f32.mrb[7].mxu0 }
 0x2d5   :  { %616 = shalt.err (!%p613_p6)
}
 0x2d6   :  { %s617_s6 = scalar_lea.hbm %s789_s7, 128 }
 0x2d7   :  { %p618_p7 = scmp.ne.s32.totalorder %s789_s7, %s617_s6  ;;  %p621_p8 = scmp.lt.u32.totalorder %s617_s6, %s789_s7 }
 0x2d9   :  { %p623_p9 = pnand %p621_p8, %p618_p7 }
 0x2db   :  { %626 = shalt.err (!%p623_p9)
}
 0x2dc   :  { %409 = dma.vmem_to_hbm [thread:$0]  %s407_s24, 128, %s789_s7, [#allocation4]  }
 0x2dd   :  { %631 = dma.done.wait [#allocation4], 128  }
 0x2de   :  { %632 = vsyncadd [#allocation4], 4294967168 }
 0x2df   :  { %413 = vsyncpa [#allocation3], 1 }
 0x2e0   :  { %414 = vsyncpa [#allocation6], 1 }
 0x2e1   :  { %415 = vsyncpa [#allocation4], 1 }

</bundles_post_ra>
